<compile_context>
chip_gen: v5e
topology: v5e:2x2
jax: 0.10.0
libtpu: 0.0.40
codegen_flags: <defaults>
</compile_context>

<pallas_src>
import functools

import jax
import jax.numpy as jnp
from jax.experimental import pallas as pl
from jax.experimental.pallas import tpu as pltpu


def _pick_tile(n, target):
    """Largest divisor of n <= target, preferring multiples of 128 (lane-dense),
    then 16, then 8; falls back to n (full dimension)."""
    if n <= target:
        return n
    for mult in (128, 16, 8):
        t = (target // mult) * mult
        while t >= mult:
            if n % t == 0:
                return t
            t -= mult
    return n


def _tpu_config():
    """Per-generation knobs: (softmax dtype, vmem_limit_bytes, default kv tile)."""
    try:
        kind = jax.devices()[0].device_kind.lower()
    except Exception:
        kind = ""
    if "v5" in kind:
        # v5e has no bf16 EUP/VPU path: keep softmax math in f32.
        return jnp.float32, 96 * 1024 * 1024, 256
    if "v6" in kind:
        return jnp.bfloat16, 96 * 1024 * 1024, 256
    if "v7" in kind or "7x" in kind:
        # 64 MiB physical VMEM per TensorCore -> conservative limit, smaller kv tile.
        return jnp.bfloat16, 40 * 1024 * 1024, 128
    # Unknown / older hardware: safest settings (compiler-default VMEM limit).
    return jnp.float32, None, 256


# ---------------------------------------------------------------------------
# Pass 1: fused QKV projection
#   Q -> (B, N, C)      lane-dense (softmax scale folded into the Q weight)
#   K -> (B, H, hd, N)  pre-transposed for the score matmul
#   V -> (B, H, N, hd)  head-major for the PV matmul
# ---------------------------------------------------------------------------
def _qkv_proj_kernel(x_ref, wq_ref, wk_ref, wv_ref, q_ref, k_ref, v_ref, *,
                     num_heads, head_dim):
    x = x_ref[0]                                                  # (tr, C)

    # Q: single full-width (lane-dense) store; scale already folded into wq.
    q = jnp.dot(x, wq_ref[...], preferred_element_type=jnp.float32)
    q_ref[0] = q.astype(q_ref.dtype)

    # K: (tr, C) -> (C, tr) [2-D transpose] -> (H, hd, tr) [free leading split].
    k = jnp.dot(x, wk_ref[...], preferred_element_type=jnp.float32)
    k_ref[0] = k.astype(k_ref.dtype).T.reshape(num_heads, head_dim, -1)

    # V: (tr, C) -> (H, hd, tr) -> (H, tr, hd) [batched minor-2D transpose].
    v = jnp.dot(x, wv_ref[...], preferred_element_type=jnp.float32)
    v_t = v.astype(v_ref.dtype).T.reshape(num_heads, head_dim, -1)
    v_ref[0] = jnp.swapaxes(v_t, 1, 2)


# ---------------------------------------------------------------------------
# Pass 2: flash attention (online softmax) + fused head-concat / output proj
# ---------------------------------------------------------------------------
def _flash_attn_proj_kernel(q_ref, k_ref, v_ref, wproj_ref, bproj_ref, o_ref,
                            qh_sc, m_sc, l_sc, acc_sc, *,
                            num_heads, head_dim, softmax_dtype):
    # q_ref: (1, tq, C)  k_ref: (1, H, hd, tk)  v_ref: (1, H, tk, hd)
    # wproj_ref: (C, C)  bproj_ref: (1, C) f32  o_ref: (1, tq, C)
    # scratch: qh_sc (H, tq, hd) compute dtype; m/l (H, tq, 1) f32; acc (H, tq, hd) f32
    ki = pl.program_id(2)
    nk = pl.num_programs(2)
    C = num_heads * head_dim

    @pl.when(ki == 0)
    def _init():
        m_sc[...] = jnp.full(m_sc.shape, -jnp.inf, m_sc.dtype)
        l_sc[...] = jnp.zeros(l_sc.shape, l_sc.dtype)
        acc_sc[...] = jnp.zeros(acc_sc.shape, acc_sc.dtype)
        # Head-split Q once per (b, q-tile): (tq, C) -> (C, tq) -> (H, hd, tq)
        # -> (H, tq, hd). Runs outside the hot kv loop.
        q = q_ref[0]
        qh_sc[...] = jnp.swapaxes(q.T.reshape(num_heads, head_dim, -1), 1, 2)

    qh = qh_sc[...]                                               # (H, tq, hd)
    k = k_ref[0]                                                  # (H, hd, tk)
    v = v_ref[0]                                                  # (H, tk, hd)

    # Scores: pure batched matmul on the MXU, no per-step transposes.
    s = jnp.einsum('hqd,hdk->hqk', qh, k,
                   preferred_element_type=jnp.float32)            # (H, tq, tk) f32

    m_prev = m_sc[...]                                            # (H, tq, 1)
    m_new = jnp.maximum(m_prev, jnp.max(s, axis=-1, keepdims=True))
    alpha = jnp.exp(m_prev - m_new)                               # (H, tq, 1) f32

    # Probabilities: bf16 exp on v6e/v7x (bf16 EUP), f32 on v5e / unknown.
    p = jnp.exp((s - m_new).astype(softmax_dtype))                # (H, tq, tk)

    # Row-sum accumulated in f32 for the online-softmax denominator.
    l_sc[...] = alpha * l_sc[...] + jnp.sum(p.astype(jnp.float32),
                                            axis=-1, keepdims=True)
    p_mm = p if p.dtype == v.dtype else p.astype(v.dtype)
    acc_sc[...] = alpha * acc_sc[...] + jnp.einsum(
        'hqk,hkd->hqd', p_mm, v, preferred_element_type=jnp.float32)
    m_sc[...] = m_new

    @pl.when(ki == nk - 1)
    def _finalize():
        # Exact normalization (runs once per (b, q-tile), amortized over kv steps).
        inv_l = 1.0 / l_sc[...]                                   # (H, tq, 1) f32
        out_h = (acc_sc[...] * inv_l).astype(o_ref.dtype)         # (H, tq, hd)
        # Head-concat: (H, tq, hd) -> (H, hd, tq) -> (C, tq) [free] -> (tq, C).
        out2 = jnp.swapaxes(out_h, 1, 2).reshape(C, -1).T         # (tq, C)
        # Single depth-C matmul for the fused output projection.
        y = jnp.dot(out2, wproj_ref[...], preferred_element_type=jnp.float32)
        y = y + bproj_ref[...].astype(jnp.float32)                # (tq, C) + (1, C)
        o_ref[0] = y.astype(o_ref.dtype)


def attention_pallas(x, wqkv, wproj, bproj, xpos=None, *, num_heads,
                     rope=None, q_tile=None, kv_tile=None):
    """CroCo Attention forward.

    x:     (B, N, C)   activations (bf16 recommended on TPU)
    wqkv:  (3C, C)     nn.Linear weight (y = x @ W^T), qkv_bias=False
    wproj: (C, C)      output projection weight
    bproj: (C,)        output projection bias
    xpos:  unused when rope is None (matches the PyTorch module)
    """
    if rope is not None:
        # TODO(synk): rotary position embedding (rope) of q/k is not implemented.
        raise NotImplementedError("rope is not supported by this kernel")
    del xpos

    B, N, C = x.shape
    assert C % num_heads == 0
    hd = C // num_heads
    scale = hd ** (-0.5)
    dt = x.dtype

    softmax_dtype, vmem_limit, kv_target = _tpu_config()
    q_target = 256 if q_tile is None else q_tile
    kv_target = kv_target if kv_tile is None else kv_tile

    # --- weight prep (plain XLA, once): transpose for x @ W, fold the softmax
    # scale into the Q columns, split the fused QKV weight, cast. ---
    wqkv_t = jnp.transpose(wqkv).astype(jnp.float32)              # (C, 3C)
    wq_t = (wqkv_t[:, :C] * scale).astype(dt)                     # (C, C)
    wk_t = wqkv_t[:, C:2 * C].astype(dt)                          # (C, C)
    wv_t = wqkv_t[:, 2 * C:].astype(dt)                           # (C, C)
    wproj_t = jnp.transpose(wproj).astype(dt)                     # (C, C)
    bproj_2d = bproj.reshape(1, C).astype(jnp.float32)            # exact bias add

    # ---- pass 1: QKV projection ----
    tr = _pick_tile(N, q_target)
    qkv_kernel = functools.partial(_qkv_proj_kernel,
                                   num_heads=num_heads, head_dim=hd)
    q, k, v = pl.pallas_call(
        qkv_kernel,
        out_shape=(
            jax.ShapeDtypeStruct((B, N, C), dt),                  # Q lane-dense
            jax.ShapeDtypeStruct((B, num_heads, hd, N), dt),      # K pre-transposed
            jax.ShapeDtypeStruct((B, num_heads, N, hd), dt),      # V head-major
        ),
        grid_spec=pltpu.PrefetchScalarGridSpec(
            num_scalar_prefetch=0,
            grid=(B, N // tr),
            in_specs=[
                pl.BlockSpec((1, tr, C), lambda b, i: (b, i, 0)),
                pl.BlockSpec((C, C), lambda b, i: (0, 0)),
                pl.BlockSpec((C, C), lambda b, i: (0, 0)),
                pl.BlockSpec((C, C), lambda b, i: (0, 0)),
            ],
            out_specs=[
                pl.BlockSpec((1, tr, C), lambda b, i: (b, i, 0)),
                pl.BlockSpec((1, num_heads, hd, tr), lambda b, i: (b, 0, 0, i)),
                pl.BlockSpec((1, num_heads, tr, hd), lambda b, i: (b, 0, i, 0)),
            ],
        ),
        compiler_params=pltpu.CompilerParams(
            dimension_semantics=("parallel", "parallel"),
            vmem_limit_bytes=vmem_limit,
        ),
    )(x, wq_t, wk_t, wv_t)

    # ---- pass 2: flash attention + fused output projection ----
    tq = _pick_tile(N, q_target)
    tk = _pick_tile(N, kv_target)
    flash_kernel = functools.partial(_flash_attn_proj_kernel,
                                     num_heads=num_heads, head_dim=hd,
                                     softmax_dtype=softmax_dtype)
    out = pl.pallas_call(
        flash_kernel,
        out_shape=jax.ShapeDtypeStruct((B, N, C), dt),
        grid_spec=pltpu.PrefetchScalarGridSpec(
            num_scalar_prefetch=0,
            grid=(B, N // tq, N // tk),
            in_specs=[
                pl.BlockSpec((1, tq, C), lambda b, qi, ki: (b, qi, 0)),
                pl.BlockSpec((1, num_heads, hd, tk), lambda b, qi, ki: (b, 0, 0, ki)),
                pl.BlockSpec((1, num_heads, tk, hd), lambda b, qi, ki: (b, 0, ki, 0)),
                pl.BlockSpec((C, C), lambda b, qi, ki: (0, 0)),
                pl.BlockSpec((1, C), lambda b, qi, ki: (0, 0)),
            ],
            out_specs=pl.BlockSpec((1, tq, C), lambda b, qi, ki: (b, qi, 0)),
            scratch_shapes=[
                pltpu.VMEM((num_heads, tq, hd), dt),           # head-split Q
                pltpu.VMEM((num_heads, tq, 1), jnp.float32),   # running max m
                pltpu.VMEM((num_heads, tq, 1), jnp.float32),   # running sum l
                pltpu.VMEM((num_heads, tq, hd), jnp.float32),  # un-normalized acc
            ],
        ),
        compiler_params=pltpu.CompilerParams(
            dimension_semantics=("parallel", "parallel", "arbitrary"),
            vmem_limit_bytes=vmem_limit,
        ),
    )(q, k, v, wproj_t, bproj_2d)
    return out


def attention_reference(x, wqkv, wproj, bproj, *, num_heads):
    """Pure-JAX f32 reference mirroring the PyTorch forward."""
    B, N, C = x.shape
    hd = C // num_heads
    scale = hd ** (-0.5)
    x = x.astype(jnp.float32)
    wqkv = wqkv.astype(jnp.float32)
    wproj = wproj.astype(jnp.float32)
    bproj = bproj.astype(jnp.float32)
    qkv = jnp.einsum('bnc,oc->bno', x, wqkv)                      # (B, N, 3C)
    qkv = qkv.reshape(B, N, 3, num_heads, hd).transpose(0, 3, 2, 1, 4)
    q, k, v = qkv[:, :, 0], qkv[:, :, 1], qkv[:, :, 2]
    attn = jnp.einsum('bhqd,bhkd->bhqk', q, k) * scale
    attn = jax.nn.softmax(attn, axis=-1)
    out = jnp.einsum('bhqk,bhkd->bhqd', attn, v)
    out = out.transpose(0, 2, 1, 3).reshape(B, N, C)
    return jnp.einsum('bnc,oc->bno', out, wproj) + bproj


if __name__ == "__main__":
    # Small shapes; N=256 with 128-wide tiles so the online-softmax kv loop
    # (init / rescale / finalize) actually runs for multiple steps.
    B, N, C = 2, 256, 32
    num_heads = 4

    key = jax.random.PRNGKey(0)
    kx, kw1, kw2, kb = jax.random.split(key, 4)

    x_f32 = jax.random.normal(kx, (B, N, C), dtype=jnp.float32)
    wqkv_f32 = jax.random.normal(kw1, (3 * C, C), dtype=jnp.float32) * 0.1
    wproj_f32 = jax.random.normal(kw2, (C, C), dtype=jnp.float32) * 0.05
    bproj_f32 = jax.random.normal(kb, (C,), dtype=jnp.float32) * 0.05

    # Recommended TPU path: bf16 operands, f32 accumulation inside the kernels.
    x = x_f32.astype(jnp.bfloat16)
    wqkv = wqkv_f32.astype(jnp.bfloat16)
    wproj = wproj_f32.astype(jnp.bfloat16)
    bproj = bproj_f32.astype(jnp.bfloat16)

    out = attention_pallas(x, wqkv, wproj, bproj, num_heads=num_heads,
                           q_tile=128, kv_tile=128)
    out = jax.block_until_ready(out)
    assert out.shape == (B, N, C)
    assert out.dtype == x.dtype

    # Reference computed in f32 from the same (bf16-rounded) inputs; remaining
    # error comes only from in-kernel bf16 rounding (weights / p) -> 2e-2 tol.
    ref = attention_reference(x, wqkv, wproj, bproj, num_heads=num_heads)
    out_f32 = out.astype(jnp.float32)
    max_err = float(jnp.max(jnp.abs(out_f32 - ref)))
    assert jnp.allclose(out_f32, ref, atol=2e-2, rtol=2e-2), (
        f"mismatch vs reference, max abs err = {max_err}")

    print("KERNEL_OK")
</pallas_src>

<mosaic_0001>
module attributes {stable_mosaic.version = 11 : i64} {
  func.func @_qkv_proj_kernel(%arg0: i32, %arg1: i32, %arg2: memref<1x128x32xbf16, #tpu.memory_space<vmem>>, %arg3: memref<32x32xbf16, #tpu.memory_space<vmem>>, %arg4: memref<32x32xbf16, #tpu.memory_space<vmem>>, %arg5: memref<32x32xbf16, #tpu.memory_space<vmem>>, %arg6: memref<1x128x32xbf16, #tpu.memory_space<vmem>>, %arg7: memref<1x4x8x128xbf16, #tpu.memory_space<vmem>>, %arg8: memref<1x4x128x8xbf16, #tpu.memory_space<vmem>>) attributes {dimension_semantics = [#tpu.dimension_semantics<parallel>, #tpu.dimension_semantics<parallel>], iteration_bounds = array<i64: 2, 2>, scalar_prefetch = 0 : i64, scratch_operands = 0 : i64, tpu.core_type = #tpu.core_type<tc>, window_params = [{transform_indices = @transform_0, window_bounds = array<i64: 1, 128, 32>}, {pipeline_mode = #tpu.pipeline_mode<synchronous>, transform_indices = @transform_1, window_bounds = array<i64: 32, 32>}, {pipeline_mode = #tpu.pipeline_mode<synchronous>, transform_indices = @transform_2, window_bounds = array<i64: 32, 32>}, {pipeline_mode = #tpu.pipeline_mode<synchronous>, transform_indices = @transform_3, window_bounds = array<i64: 32, 32>}, {transform_indices = @transform_4, window_bounds = array<i64: 1, 128, 32>}, {transform_indices = @transform_5, window_bounds = array<i64: 1, 4, 8, 128>}, {transform_indices = @transform_6, window_bounds = array<i64: 1, 4, 128, 8>}]} {
    %c0 = arith.constant 0 : index
    %c0_0 = arith.constant 0 : index
    %c0_1 = arith.constant 0 : index
    %0 = vector.load %arg2[%c0, %c0_0, %c0_1] : memref<1x128x32xbf16, #tpu.memory_space<vmem>>, vector<1x128x32xbf16>
    %1 = vector.shape_cast %0 : vector<1x128x32xbf16> to vector<128x32xbf16>
    %c0_2 = arith.constant 0 : index
    %c0_3 = arith.constant 0 : index
    %2 = vector.load %arg3[%c0_2, %c0_3] : memref<32x32xbf16, #tpu.memory_space<vmem>>, vector<32x32xbf16>
    %cst = arith.constant dense<0.000000e+00> : vector<128x32xf32>
    %3 = tpu.matmul %1, %2, %cst {dimension_numbers = #tpu.dot_dimension_numbers<[1], [0], [0], [1], [0, 0, 1, 1], [], []>} : vector<128x32xbf16>, vector<32x32xbf16>, vector<128x32xf32> -> vector<128x32xf32>
    %4 = arith.truncf %3 : vector<128x32xf32> to vector<128x32xbf16>
    %c0_4 = arith.constant 0 : index
    %c0_5 = arith.constant 0 : index
    %c0_6 = arith.constant 0 : index
    %5 = vector.load %arg6[%c0_4, %c0_5, %c0_6] : memref<1x128x32xbf16, #tpu.memory_space<vmem>>, vector<1x128x32xbf16>
    %6 = vector.shape_cast %5 : vector<1x128x32xbf16> to vector<128x32xbf16>
    %7 = vector.shape_cast %4 : vector<128x32xbf16> to vector<1x128x32xbf16>
    tpu.vector_store %arg6[%c0_4, %c0_5, %c0_6], %7 {strides = array<i32>} : memref<1x128x32xbf16, #tpu.memory_space<vmem>>, vector<1x128x32xbf16>,
    %c0_7 = arith.constant 0 : index
    %c0_8 = arith.constant 0 : index
    %8 = vector.load %arg4[%c0_7, %c0_8] : memref<32x32xbf16, #tpu.memory_space<vmem>>, vector<32x32xbf16>
    %cst_9 = arith.constant dense<0.000000e+00> : vector<128x32xf32>
    %9 = tpu.matmul %1, %8, %cst_9 {dimension_numbers = #tpu.dot_dimension_numbers<[1], [0], [0], [1], [0, 0, 1, 1], [], []>} : vector<128x32xbf16>, vector<32x32xbf16>, vector<128x32xf32> -> vector<128x32xf32>
    %10 = arith.truncf %9 : vector<128x32xf32> to vector<128x32xbf16>
    %11 = tpu.transpose %10, [1, 0] : vector<128x32xbf16> -> vector<32x128xbf16>
    %12 = vector.shape_cast %11 : vector<32x128xbf16> to vector<4x8x128xbf16>
    %c0_10 = arith.constant 0 : index
    %c0_11 = arith.constant 0 : index
    %c0_12 = arith.constant 0 : index
    %c0_13 = arith.constant 0 : index
    %13 = vector.load %arg7[%c0_10, %c0_11, %c0_12, %c0_13] : memref<1x4x8x128xbf16, #tpu.memory_space<vmem>>, vector<1x4x8x128xbf16>
    %14 = vector.shape_cast %13 : vector<1x4x8x128xbf16> to vector<4x8x128xbf16>
    %15 = vector.shape_cast %12 : vector<4x8x128xbf16> to vector<1x4x8x128xbf16>
    tpu.vector_store %arg7[%c0_10, %c0_11, %c0_12, %c0_13], %15 {strides = array<i32>} : memref<1x4x8x128xbf16, #tpu.memory_space<vmem>>, vector<1x4x8x128xbf16>,
    %c0_14 = arith.constant 0 : index
    %c0_15 = arith.constant 0 : index
    %16 = vector.load %arg5[%c0_14, %c0_15] : memref<32x32xbf16, #tpu.memory_space<vmem>>, vector<32x32xbf16>
    %cst_16 = arith.constant dense<0.000000e+00> : vector<128x32xf32>
    %17 = tpu.matmul %1, %16, %cst_16 {dimension_numbers = #tpu.dot_dimension_numbers<[1], [0], [0], [1], [0, 0, 1, 1], [], []>} : vector<128x32xbf16>, vector<32x32xbf16>, vector<128x32xf32> -> vector<128x32xf32>
    %18 = arith.truncf %17 : vector<128x32xf32> to vector<128x32xbf16>
    %19 = tpu.transpose %18, [1, 0] : vector<128x32xbf16> -> vector<32x128xbf16>
    %20 = vector.shape_cast %19 : vector<32x128xbf16> to vector<4x8x128xbf16>
    %21 = tpu.transpose %20, [0, 2, 1] : vector<4x8x128xbf16> -> vector<4x128x8xbf16>
    %c0_17 = arith.constant 0 : index
    %c0_18 = arith.constant 0 : index
    %c0_19 = arith.constant 0 : index
    %c0_20 = arith.constant 0 : index
    %22 = vector.load %arg8[%c0_17, %c0_18, %c0_19, %c0_20] : memref<1x4x128x8xbf16, #tpu.memory_space<vmem>>, vector<1x4x128x8xbf16>
    %23 = vector.shape_cast %22 : vector<1x4x128x8xbf16> to vector<4x128x8xbf16>
    %24 = vector.shape_cast %21 : vector<4x128x8xbf16> to vector<1x4x128x8xbf16>
    tpu.vector_store %arg8[%c0_17, %c0_18, %c0_19, %c0_20], %24 {strides = array<i32>} : memref<1x4x128x8xbf16, #tpu.memory_space<vmem>>, vector<1x4x128x8xbf16>,
    return
  }
  func.func @transform_0(%arg0: i32, %arg1: i32) -> (i32, i32, i32) {
    %c0_i32 = arith.constant 0 : i32
    %c0_i32_0 = arith.constant 0 : i32
    return %arg0, %arg1, %c0_i32 : i32, i32, i32
  }
  func.func @transform_1(%arg0: i32, %arg1: i32) -> (i32, i32) {
    %c0_i32 = arith.constant 0 : i32
    %c0_i32_0 = arith.constant 0 : i32
    %c0_i32_1 = arith.constant 0 : i32
    return %c0_i32, %c0_i32_0 : i32, i32
  }
  func.func @transform_2(%arg0: i32, %arg1: i32) -> (i32, i32) {
    %c0_i32 = arith.constant 0 : i32
    %c0_i32_0 = arith.constant 0 : i32
    %c0_i32_1 = arith.constant 0 : i32
    return %c0_i32, %c0_i32_0 : i32, i32
  }
  func.func @transform_3(%arg0: i32, %arg1: i32) -> (i32, i32) {
    %c0_i32 = arith.constant 0 : i32
    %c0_i32_0 = arith.constant 0 : i32
    %c0_i32_1 = arith.constant 0 : i32
    return %c0_i32, %c0_i32_0 : i32, i32
  }
  func.func @transform_4(%arg0: i32, %arg1: i32) -> (i32, i32, i32) {
    %c0_i32 = arith.constant 0 : i32
    %c0_i32_0 = arith.constant 0 : i32
    return %arg0, %arg1, %c0_i32 : i32, i32, i32
  }
  func.func @transform_5(%arg0: i32, %arg1: i32) -> (i32, i32, i32, i32) {
    %c0_i32 = arith.constant 0 : i32
    %c0_i32_0 = arith.constant 0 : i32
    %c0_i32_1 = arith.constant 0 : i32
    return %arg0, %c0_i32, %c0_i32_0, %arg1 : i32, i32, i32, i32
  }
  func.func @transform_6(%arg0: i32, %arg1: i32) -> (i32, i32, i32, i32) {
    %c0_i32 = arith.constant 0 : i32
    %c0_i32_0 = arith.constant 0 : i32
    %c0_i32_1 = arith.constant 0 : i32
    return %arg0, %c0_i32, %arg1, %c0_i32_0 : i32, i32, i32, i32
  }
}

</mosaic_0001>

<bundles_post_ra>
// kernel: tpu_custom_call.1
= control target key start
LH: loop header
LB: loop body
LE: loop exit
PB: predicated region body
PF: predicated region fallthrough
CT: control target
= control target key end

     0   :  { %s2353_s0 = inlined_call_operand.vmem [shape: bf16[2,256,32], index: 0, kind: input, shape index: {}]   ;;  %s2354_s1 = inlined_call_operand.vmem [shape: bf16[32,32], index: 1, kind: input, shape index: {}]   ;;  %s2355_s2 = inlined_call_operand.vmem [shape: bf16[32,32], index: 2, kind: input, shape index: {}]   ;;  %s2356_s3 = inlined_call_operand.vmem [shape: bf16[32,32], index: 3, kind: input, shape index: {}]   ;;  %s2357_s4 = inlined_call_operand.vmem [shape: bf16[2,256,32], index: 4, kind: output, shape index: {0}]   ;;  %s2358_s5 = inlined_call_operand.hbm [shape: bf16[2,4,8,256], index: 5, kind: output, shape index: {1}]   ;;  %s2359_s6 = inlined_call_operand.vmem [shape: bf16[2,4,256,8], index: 6, kind: output, shape index: {2}]  }
   0x1   :  { %2360 = sst [smem:[#allocation6_spill]] %s2353_s0 }
   0x2   :  { %2361 = sst [smem:[#allocation7_spill]] %s2354_s1 }
   0x3   :  { %2362 = sst [smem:[#allocation8_spill]] %s2355_s2 }
   0x4   :  { %2363 = sst [smem:[#allocation9_spill]] %s2356_s3 }
   0x5   :  { %12 = vsyncpa [#allocation3], 0 }
   0x6   :  { %14 = vsyncpa [#allocation3 + $0x1], 0  ;;  %s1917_s21 = smov 0   ;;  %s1919_s22 = smov 0  }
   0x7   :  { %s1921_s23 = smov 0   ;;  %s1923_s24 = smov 0  }
   0x8   :  { %s1925_s25 = smov 0   ;;  %s1927_s26 = smov 0  }
   0x9   :  { %s1929_s27 = smov 0   ;;  %s1931_s28 = smov 0  }
   0xa LB: > { %s1540_s29 = sadd.s32 4294967295, %s1877_s28   ;;  %s1541_s30 = sadd.s32 4294967294, %s1877_s28   ;;  %s1877_s28 = sphi %s1931_s28, %s20_s28   ;;  %s1873_s27 = sphi %s1929_s27, %s2376_s27   ;;  %s1869_s26 = sphi %s1927_s26, %s2375_s26   ;;  %s1865_s25 = sphi %s1925_s25, %s2374_s25   ;;  %s1861_s24 = sphi %s1923_s24, %s2373_s24   ;;  %s1857_s23 = sphi %s1921_s23, %s2372_s23   ;;  %s1853_s22 = sphi %s1919_s22, %s2371_s22   ;;  %s1849_s21 = sphi %s1917_s21, %s2370_s21  }
   0xb   : > { %s29_s7 = sadd.s32 1, %s1869_s26  ;;  %s32_s8 = sadd.s32 1, %s1873_s27 }
   0xc   : > { %p30_p0 = scmp.ge.s32.totalorder %s29_s7, 2  ;;  %p170_p1 = scmp.ne.s32.totalorder %s1857_s23, %s1853_s22 }
   0xd   : > { %p171_p2 = scmp.eq.s32.totalorder %s1540_s29, 3  ;;  %p176_p5 = scmp.ne.s32.totalorder %s1853_s22, %s1849_s21 }
   0xe   : > { %s2378_s7 = smov (%p30_p0, %s29_s7), 0  ;;  %s2380_s8 = smov (!%p30_p0, %s32_s8), %s1873_s27 }
   0xf   : > { %s156_s9 = ssub.s32 %s1869_s26, %s2378_s7  ;;  %p1968_p3 = por %p171_p2, %p170_p1 }
  0x10   : > { %p34_p4 = scmp.ge.s32.totalorder %s2380_s8, 2  ;;  %p177_p6 = scmp.eq.s32.totalorder %s1541_s30, 3 }
  0x11   : > { %p1544_p7 = scmp.ge.s32.totalorder %s1877_s28, 1  ;;  %p245_p9 = scmp.lt.s32.totalorder %s1877_s28, 5 }
  0x12   : > { %s2382_s8 = smov (%p34_p4, %s2380_s8), 0  ;;  %p1977_p8 = por %p177_p6, %p176_p5 }
  0x13   : > { %s155_s12 = ssub.s32 %s1873_s27, %s2382_s8  ;;  %s160_s13 = sadd.s32 1, %s1857_s23 }
  0x14   : > { %s157_s14 = sor.u32 %s156_s9, %s155_s12  ;;  %p246_p10 = pnand %p1544_p7, %p245_p9 }
  0x15   : > { %p158_p11 = scmp.eq.s32.totalorder %s157_s14, 0  ;;  %s2366_s2 = sld [smem:[#allocation8_spill]] (!%p246_p10) }
  0x16   : > { %249 = sbr.rel (%p246_p10) target bundleno = 799 (0x31f), region = 36  ;;  %s2367_s3 = sld [smem:[#allocation9_spill]] (!%p246_p10) }
  0x17   : > { %s1986_s15 = scalar_select %p158_p11, %s1857_s23, %s160_s13  }
  0x18   : > { %s1995_s20 = sshll.u32 (!%p246_p10), %s1861_s24, 4  ;;  %p293_p12 = scmp.lt.s32.totalorder (!%p246_p10), %s1865_s25, 1 }
  0x19   : > { %p295_p13 = scmp.lt.s32.totalorder (!%p246_p10), %s1995_s20, 31  ;;  %s2368_s1 = sld [smem:[#allocation7_spill]] (!%p246_p10) }
  0x1a   : > { %s2369_s0 = sld [smem:[#allocation6_spill]] (!%p246_p10)  ;;  %s2071_s19 = sand.u32 (!%p246_p10), 1, %s1853_s22  }
  0x1b   : > { %v1653_v0 = vld [vmem:[%s2366_s2 + $0x8] sm:$0xff]  ;;  %v1652_v3 = vld [vmem:[%s2366_s2] sm:$0xff]  ;;  %s294_s16 = scalar_select %p293_p12, %s1865_s25, 1  ;;  %vm386_vm0 = vcmask 261120   ;;  %vm476_vm1 = vcmask 257024   ;;  %vm991_vm2 = vcmask 60416  }
  0x1c   : > { %v1655_v1 = vld [vmem:[%s2367_s3 + $0x8] sm:$0xff]  ;;  %515 = vmatpush.bf16.msra.mxu1 %v1653_v0  ;;  %v1654_v4 = vld [vmem:[%s2367_s3] sm:$0xff]  ;;  %s296_s17 = scalar_select %p295_p13, %s1995_s20, 31 }
  0x1d   : > { %622 = vmatpush.bf16.msra.mxu2 %v1655_v1  ;;  %s1548_s29 = sshll.u32 %s294_s16, 5  ;;  %s1635_s13 = sshll.u32 %s1865_s25, 3 }
  0x1e   : > { %s2013_s30 = sadd.s32 %s1548_s29, %s296_s17  ;;  %s1545_s29 = sshll.u32 %s2071_s19, 4 }
  0x1f   : > { %v1651_v2 = vld [vmem:[%s2368_s1 + $0x8] sm:$0xff]  ;;  %v1650_v5 = vld [vmem:[%s2368_s1] sm:$0xff]  ;;  %s1549_s9 = sshll.u32 %s2013_s30, 2  ;;  %s2074_s30 = scalar_lea.vmem [#allocation2], %s1545_s29 }
  0x20   : > { %1656 = vmatpush.bf16.msra.mxu3 %v1651_v2  ;;  %417 = vmatpush.bf16.msra.mxu0 %v1651_v2  ;;  %s2021_s14 = scalar_lea.vmem %s2369_s0, %s1549_s9  ;;  %s2060_s18 = scalar_lea.vmem %s2357_s4, %s1549_s9 }
  0x21   : > { %516 = vmatpush.bf16.msra.mxu1 %v1652_v3  ;;  %623 = vmatpush.bf16.msra.mxu2 %v1654_v4  ;;  %v1642_v6 = vld [vmem:[%s2021_s14] sm:$0xff]  ;;  %v1648_v7 = vld [vmem:[%s2021_s14 + $0x30] sm:$0xff]  ;;  %v1643_v8 = vld [vmem:[%s2021_s14 + $0x8] sm:$0xff]  ;;  %s1546_s9 = sshll.u32 %s2071_s19, 8  ;;  %s1084_s16 = sadd.s32 %s1861_s24, %s1635_s13 }
  0x22   : > { %v1649_v9 = vld [vmem:[%s2021_s14 + $0x38] sm:$0xff]  ;;  %v1644_v10 = vld [vmem:[%s2021_s14 + $0x10] sm:$0xff]  ;;  %v1646_v12 = vld [vmem:[%s2021_s14 + $0x20] sm:$0xff]  ;;  %s2081_s12 = scalar_lea.vmem [#allocation4], %s1546_s9  ;;  %s1636_s17 = sshll.u32 %s1084_s16, 2 }
  0x23   : > { %v1645_v11 = vld [vmem:[%s2021_s14 + $0x18] sm:$0xff]  ;;  %v1647_v13 = vld [vmem:[%s2021_s14 + $0x28] sm:$0xff]  ;;  %s1087_s14 = sshll.u32 %s2074_s30, 4  ;;  %s1086_s0 = scalar_lea.hbm %s2358_s5, %s1636_s17  ;;  %s1088_s14 = int_to_ptr.vmem [resolvable:$true] %s1087_s14 }
  0x24   : > { %1657 = vmatpush.bf16.msra.mxu3 %v1650_v5  ;;  %418 = vmatpush.bf16.msra.mxu0 %v1650_v5  ;;  %s1089_s1 = sshll.u32 %s1086_s0, 4  ;;  %s1803_s17 = scalar_lea.hbm %s2358_s5, 64  ;;  %s1090_s1 = int_to_ptr.hbm [resolvable:$true] %s1089_s1 }
  0x25   : > { %1609 = vmatmul.msk.bf16.vlgmr.msra.gmra.mxu1 %vm386_vm0, %v1642_v6  ;;  %1625 = vmatmul.msk.bf16.vlgmr.msra.gmra.mxu2 %vm386_vm0, %v1642_v6  ;;  %s1797_s2 = sshra.s32 %s1090_s1, 4  ;;  %s1798_s2 = int_to_ptr.hbm [resolvable:$true] %s1797_s2 }
  0x26   : > { %s1799_s24 = scalar_lea.hbm %s1798_s2, 16  ;;  %p1804_p4 = scmp.lt.s32.totalorder %s1798_s2, %s2358_s5 }
  0x27   : > { %1599 = vmatmul.msk.bf16.vlgmr.msra.gmra.mxu3 %vm386_vm0, %v1648_v7  ;;  %1593 = vmatmul.msk.bf16.vlgmr.msra.gmra.mxu0 %vm386_vm0, %v1642_v6  ;;  %p1800_p0 = scmp.ne.s32.totalorder %s1798_s2, %s1799_s24  ;;  %p1805_p5 = scmp.lt.s32.totalorder %s1803_s17, %s1799_s24 }
  0x28   : > { %1658 = vmatpush.bf16.msrb.mxu3 %v1653_v0 }
  0x29   : > { %p1801_p1 = pnand %p1800_p0, %p1968_p3  ;;  %p1806_p6 = por %p1805_p5, %p1804_p4 }
  0x2b   : > { %p1802_p2 = pneg %p1801_p1 }
  0x2c   : > { %1659 = vmatpush.bf16.msrb.mxu3 %v1652_v3 }
  0x2d   : > { %p1807_p7 = pnand %p1806_p6, %p1802_p2 }
  0x30   : > { %1660 = vmatpush.bf16.msra.mxu3 %v1655_v1 }
  0x34   : > { %1661 = vmatpush.bf16.msra.mxu3 %v1654_v4 }
  0x35   : > { %1610 = vmatmul.msk.bf16.gmra.mxu1 %vm386_vm0, %v1643_v8  ;;  %1626 = vmatmul.msk.bf16.gmra.mxu2 %vm386_vm0, %v1643_v8 }
  0x37   : > { %1600 = vmatmul.msk.bf16.gmra.mxu3 %vm386_vm0, %v1649_v9  ;;  %1594 = vmatmul.msk.bf16.gmra.mxu0 %vm386_vm0, %v1643_v8 }
  0x45   : > { %1611 = vmatmul.msk.bf16.gmra.mxu1 %vm386_vm0, %v1644_v10  ;;  %1627 = vmatmul.msk.bf16.gmra.mxu2 %vm386_vm0, %v1644_v10 }
  0x47   : > { %1615 = vmatmul.msk.bf16.vlgmr.msrb.gmra.mxu3 %vm386_vm0, %v1648_v7  ;;  %1595 = vmatmul.msk.bf16.gmra.mxu0 %vm386_vm0, %v1644_v10 }
  0x55   : > { %1612 = vmatmul.msk.bf16.gmra.mxu1 %vm386_vm0, %v1645_v11  ;;  %1628 = vmatmul.msk.bf16.gmra.mxu2 %vm386_vm0, %v1645_v11 }
  0x57   : > { %1616 = vmatmul.msk.bf16.gmra.mxu3 %vm386_vm0, %v1649_v9  ;;  %1596 = vmatmul.msk.bf16.gmra.mxu0 %vm386_vm0, %v1645_v11 }
  0x65   : > { %1613 = vmatmul.msk.bf16.gmra.mxu1 %vm386_vm0, %v1646_v12  ;;  %1629 = vmatmul.msk.bf16.gmra.mxu2 %vm386_vm0, %v1646_v12 }
  0x67   : > { %1631 = vmatmul.msk.bf16.vlgmr.msra.gmra.mxu3 %vm386_vm0, %v1648_v7  ;;  %1597 = vmatmul.msk.bf16.gmra.mxu0 %vm386_vm0, %v1646_v12 }
  0x75   : > { %1614 = vmatmul.msk.bf16.gmra.mxu1 %vm386_vm0, %v1647_v13  ;;  %1630 = vmatmul.msk.bf16.gmra.mxu2 %vm386_vm0, %v1647_v13 }
  0x77   : > { %1632 = vmatmul.msk.bf16.gmra.mxu3 %vm386_vm0, %v1649_v9  ;;  %1598 = vmatmul.msk.bf16.gmra.mxu0 %vm386_vm0, %v1647_v13 }
  0xa2   : > { %v518_v14 = vpop.f32.mrf.mxu1 }
  0xa8   : > { %v625_v15 = vpop.f32.mrf.mxu2 }
  0xaa   : > { %v450_v16 = vpop.f32.mrf.mxu3  ;;  %v520_v17 = vpop.f32.mrf.mxu1 }
  0xab   : > { %v472_v18 = vpack.c.bf16 %v450_v16, %v450_v16  ;;  %v558_v20 = vpack.c.bf16 %v520_v17, %v518_v14 }
  0xad   : > { %489 = vst.msk [vmem:[%s2060_s18 + $0x30] sm:$0xf] %vm476_vm1, %v472_v18 }
  0xb0   : > { %v627_v19 = vpop.f32.mrf.mxu2 }
  0xb1   : > { %v665_v21 = vpack.c.bf16 %v627_v19, %v625_v15 }
  0xb2   : > { %v452_v22 = vpop.f32.mrf.mxu3  ;;  %v523_v23 = vpop.f32.mrf.mxu1 }
  0xb3   : > { %v473_v24 = vpack.c.bf16 %v452_v22, %v452_v22  ;;  %1737 = vxpose.binary.xlu0.c.b16.start [1/16] (narrow) %v665_v21, %v558_v20, 32 }
  0xb5   : > { %490 = vst.msk [vmem:[%s2060_s18 + $0x34] sm:$0xf] %vm476_vm1, %v473_v24 }
  0xb8   : > { %v630_v25 = vpop.f32.mrf.mxu2 }
  0xba   : > { %v455_v26 = vpop.f32.mrf.mxu3  ;;  %v525_v27 = vpop.f32.mrf.mxu1 }
  0xbb   : > { %v474_v28 = vpack.c.bf16 %v455_v26, %v455_v26  ;;  %v559_v30 = vpack.c.bf16 %v525_v27, %v523_v23 }
  0xbd   : > { %491 = vst.msk [vmem:[%s2060_s18 + $0x38] sm:$0xf] %vm476_vm1, %v474_v28 }
  0xc0   : > { %v632_v29 = vpop.f32.mrf.mxu2 }
  0xc1   : > { %v666_v31 = vpack.c.bf16 %v632_v29, %v630_v25 }
  0xc2   : > { %v457_v32 = vpop.f32.mrf.mxu3  ;;  %v528_v33 = vpop.f32.mrf.mxu1 }
  0xc3   : > { %v475_v34 = vpack.c.bf16 %v457_v32, %v457_v32  ;;  %1738 = vxpose.binary.xlu0.c.b16.cont [2/16] (narrow) %v666_v31, %v559_v30, 32 }
  0xc5   : > { %492 = vst.msk [vmem:[%s2060_s18 + $0x3c] sm:$0xf] %vm476_vm1, %v475_v34 }
  0xc8   : > { %v635_v35 = vpop.f32.mrf.mxu2 }
  0xca   : > { %v530_v36 = vpop.f32.mrf.mxu1  ;;  %v548_v42 = vpop.f32.mrf.mxu3 }
  0xcb   : > { %v560_v38 = vpack.c.bf16 %v530_v36, %v528_v33 }
  0xd0   : > { %v637_v37 = vpop.f32.mrf.mxu2 }
  0xd1   : > { %v667_v39 = vpack.c.bf16 %v637_v37, %v635_v35 }
  0xd2   : > { %v533_v40 = vpop.f32.mrf.mxu1  ;;  %v550_v48 = vpop.f32.mrf.mxu3 }
  0xd3   : > { %1739 = vxpose.binary.xlu0.c.b16.cont [3/16] (narrow) %v667_v39, %v560_v38, 32  ;;  %v564_v0 = vpack.c.bf16 %v550_v48, %v548_v42 }
  0xd8   : > { %v640_v41 = vpop.f32.mrf.mxu2 }
  0xda   : > { %v535_v43 = vpop.f32.mrf.mxu1  ;;  %v553_v51 = vpop.f32.mrf.mxu3 }
  0xdb   : > { %v561_v45 = vpack.c.bf16 %v535_v43, %v533_v40 }
  0xe0   : > { %v642_v44 = vpop.f32.mrf.mxu2 }
  0xe1   : > { %v668_v46 = vpack.c.bf16 %v642_v44, %v640_v41 }
  0xe2   : > { %v538_v47 = vpop.f32.mrf.mxu1  ;;  %v555_v56 = vpop.f32.mrf.mxu3 }
  0xe3   : > { %1740 = vxpose.binary.xlu0.c.b16.cont [4/16] (narrow) %v668_v46, %v561_v45, 32  ;;  %v565_v4 = vpack.c.bf16 %v555_v56, %v553_v51 }
  0xe8   : > { %v645_v49 = vpop.f32.mrf.mxu2 }
  0xea   : > { %v540_v50 = vpop.f32.mrf.mxu1  ;;  %v655_v60 = vpop.f32.mrf.mxu3 }
  0xeb   : > { %v562_v53 = vpack.c.bf16 %v540_v50, %v538_v47 }
  0xf0   : > { %v647_v52 = vpop.f32.mrf.mxu2 }
  0xf1   : > { %v669_v54 = vpack.c.bf16 %v647_v52, %v645_v49 }
  0xf2   : > { %v543_v55 = vpop.f32.mrf.mxu1  ;;  %v657_v63 = vpop.f32.mrf.mxu3 }
  0xf3   : > { %1741 = vxpose.binary.xlu0.c.b16.cont [5/16] (narrow) %v669_v54, %v562_v53, 32  ;;  %v671_v1 = vpack.c.bf16 %v657_v63, %v655_v60 }
  0xf8   : > { %v650_v57 = vpop.f32.mrf.mxu2 }
  0xfa   : > { %v545_v58 = vpop.f32.mrf.mxu1  ;;  %v660_v2 = vpop.f32.mrf.mxu3 }
  0xfb   : > { %v563_v61 = vpack.c.bf16 %v545_v58, %v543_v55 }
 0x100   : > { %v652_v59 = vpop.f32.mrf.mxu2 }
 0x101   : > { %v670_v62 = vpack.c.bf16 %v652_v59, %v650_v57 }
 0x102   : > { %v662_v3 = vpop.f32.mrf.mxu3 }
 0x103   : > { %1742 = vxpose.binary.xlu0.c.b16.cont [6/16] (narrow) %v670_v62, %v563_v61, 32  ;;  %v672_v5 = vpack.c.bf16 %v662_v3, %v660_v2 }
 0x113   : > { %1743 = vxpose.binary.xlu0.c.b16.cont [7/16] (narrow) %v671_v1, %v564_v0, 32 }
 0x123   : > { %1744 = vxpose.binary.xlu0.c.b16.end [8/16] (narrow) %v672_v5, %v565_v4, 32 }
 0x15f   : > { %v1745_v6 = vpop.trf.xlu0 }
 0x160   : > { %v584_v7 = vunpack.c.l.b16 %v1745_v6  ;;  %v585_v8 = vunpack.c.h.b16 %v1745_v6 }
 0x162   : > { %v588_v9 = vpack.c.b16 %v584_v7, %v584_v7  ;;  %v589_v10 = vpack.c.b16 %v585_v8, %v585_v8 }
 0x164   : > { %596 = vst [vmem:[%s2074_s30] sm:$0xf] %v588_v9 }
 0x165   : > { %597 = vst [vmem:[%s2074_s30 + $0x4] sm:$0xf] %v589_v10 }
 0x167   : > { %v1746_v11 = vpop.trf.xlu0 }
 0x168   : > { %v691_v12 = vunpack.c.l.b16 %v1746_v11  ;;  %v692_v13 = vunpack.c.h.b16 %v1746_v11 }
 0x16a   : > { %v695_v14 = vpack.c.b16 %v691_v12, %v691_v12  ;;  %v696_v15 = vpack.c.b16 %v692_v13, %v692_v13 }
 0x16c   : > { %1749 = vxpose.binary.xlu1.c.b16.start.end [1/2] (short) %v696_v15, %v695_v14, 128 }
 0x16f   : > { %v1747_v16 = vpop.trf.xlu0 }
 0x170   : > { %v586_v17 = vunpack.c.l.b16 %v1747_v16  ;;  %v587_v18 = vunpack.c.h.b16 %v1747_v16 }
 0x172   : > { %v590_v19 = vpack.c.b16 %v586_v17, %v586_v17  ;;  %v591_v20 = vpack.c.b16 %v587_v18, %v587_v18 }
 0x174   : > { %598 = vst [vmem:[%s2074_s30 + $0x8] sm:$0xf] %v590_v19 }
 0x175   : > { %599 = vst [vmem:[%s2074_s30 + $0xc] sm:$0xf] %v591_v20  ;;  %s1066_s30 = scalar_lea.sflag [#allocation3], %s2071_s19 }
 0x177   : > { %v1748_v21 = vpop.trf.xlu0 }
 0x178   : > { %v693_v22 = vunpack.c.l.b16 %v1748_v21  ;;  %v694_v23 = vunpack.c.h.b16 %v1748_v21 }
 0x17a   : > { %v697_v24 = vpack.c.b16 %v693_v22, %v693_v22  ;;  %v698_v25 = vpack.c.b16 %v694_v23, %v694_v23 }
 0x1ec   : > { %1766 = vxpose.binary.xlu1.c.b16.start.end [1/2] (short) %v698_v25, %v697_v24, 128 }
 0x218   : > { %v1750_v26 = vpop.trf.xlu1 }
 0x219   : > { %v799_v27 = vunpack.c.l.b16 %v1750_v26  ;;  %v800_v28 = vunpack.c.h.b16 %v1750_v26 }
 0x21b   : > { %v863_v29 = vpack.c.b16 %v799_v27, %v799_v27  ;;  %v864_v30 = vpack.c.b16 %v800_v28, %v800_v28 }
 0x21d   : > { %992 = vst.msk [vmem:[%s2081_s12] sm:$0xf] %vm991_vm2, %v863_v29 }
 0x21e   : > { %993 = vst.msk [vmem:[%s2081_s12 + $0x4] sm:$0xf] %vm991_vm2, %v864_v30 }
 0x220   : > { %v1751_v31 = vpop.trf.xlu1 }
 0x221   : > { %v815_v32 = vunpack.c.l.b16 %v1751_v31  ;;  %v816_v33 = vunpack.c.h.b16 %v1751_v31 }
 0x223   : > { %v879_v34 = vpack.c.b16 %v815_v32, %v815_v32  ;;  %v880_v35 = vpack.c.b16 %v816_v33, %v816_v33 }
 0x225   : > { %1008 = vst.msk [vmem:[%s2081_s12 + $0x40] sm:$0xf] %vm991_vm2, %v879_v34 }
 0x226   : > { %1009 = vst.msk [vmem:[%s2081_s12 + $0x44] sm:$0xf] %vm991_vm2, %v880_v35 }
 0x228   : > { %v1752_v36 = vpop.trf.xlu1 }
 0x229   : > { %v801_v37 = vunpack.c.l.b16 %v1752_v36  ;;  %v802_v38 = vunpack.c.h.b16 %v1752_v36 }
 0x22b   : > { %v865_v39 = vpack.c.b16 %v801_v37, %v801_v37  ;;  %v866_v40 = vpack.c.b16 %v802_v38, %v802_v38 }
 0x22d   : > { %994 = vst.msk [vmem:[%s2081_s12 + $0x8] sm:$0xf] %vm991_vm2, %v865_v39 }
 0x22e   : > { %995 = vst.msk [vmem:[%s2081_s12 + $0xc] sm:$0xf] %vm991_vm2, %v866_v40 }
 0x230   : > { %v1753_v41 = vpop.trf.xlu1 }
 0x231   : > { %v817_v42 = vunpack.c.l.b16 %v1753_v41  ;;  %v818_v43 = vunpack.c.h.b16 %v1753_v41 }
 0x233   : > { %v881_v44 = vpack.c.b16 %v817_v42, %v817_v42  ;;  %v882_v45 = vpack.c.b16 %v818_v43, %v818_v43  ;;  %v420_v42 = vpop.f32.mrf.mxu0 }
 0x234   : > { %v460_v43 = vpack.c.bf16 %v420_v42, %v420_v42 }
 0x235   : > { %1010 = vst.msk [vmem:[%s2081_s12 + $0x48] sm:$0xf] %vm991_vm2, %v881_v44 }
 0x236   : > { %1011 = vst.msk [vmem:[%s2081_s12 + $0x4c] sm:$0xf] %vm991_vm2, %v882_v45 }
 0x238   : > { %v1754_v46 = vpop.trf.xlu1 }
 0x239   : > { %v803_v47 = vunpack.c.l.b16 %v1754_v46  ;;  %v804_v48 = vunpack.c.h.b16 %v1754_v46 }
 0x23b   : > { %v867_v49 = vpack.c.b16 %v803_v47, %v803_v47  ;;  %v868_v50 = vpack.c.b16 %v804_v48, %v804_v48 }
 0x23d   : > { %996 = vst.msk [vmem:[%s2081_s12 + $0x10] sm:$0xf] %vm991_vm2, %v867_v49 }
 0x23e   : > { %997 = vst.msk [vmem:[%s2081_s12 + $0x14] sm:$0xf] %vm991_vm2, %v868_v50 }
 0x240   : > { %v1755_v51 = vpop.trf.xlu1 }
 0x241   : > { %v819_v52 = vunpack.c.l.b16 %v1755_v51  ;;  %v820_v53 = vunpack.c.h.b16 %v1755_v51 }
 0x243   : > { %v883_v54 = vpack.c.b16 %v819_v52, %v819_v52  ;;  %v884_v55 = vpack.c.b16 %v820_v53, %v820_v53 }
 0x245   : > { %1012 = vst.msk [vmem:[%s2081_s12 + $0x50] sm:$0xf] %vm991_vm2, %v883_v54 }
 0x246   : > { %1013 = vst.msk [vmem:[%s2081_s12 + $0x54] sm:$0xf] %vm991_vm2, %v884_v55 }
 0x248   : > { %v1756_v56 = vpop.trf.xlu1 }
 0x249   : > { %v805_v57 = vunpack.c.l.b16 %v1756_v56  ;;  %v806_v58 = vunpack.c.h.b16 %v1756_v56 }
 0x24b   : > { %v869_v59 = vpack.c.b16 %v805_v57, %v805_v57  ;;  %v870_v60 = vpack.c.b16 %v806_v58, %v806_v58 }
 0x24d   : > { %998 = vst.msk [vmem:[%s2081_s12 + $0x18] sm:$0xf] %vm991_vm2, %v869_v59 }
 0x24e   : > { %999 = vst.msk [vmem:[%s2081_s12 + $0x1c] sm:$0xf] %vm991_vm2, %v870_v60 }
 0x250   : > { %v1757_v61 = vpop.trf.xlu1 }
 0x251   : > { %v821_v62 = vunpack.c.l.b16 %v1757_v61  ;;  %v822_v63 = vunpack.c.h.b16 %v1757_v61 }
 0x253   : > { %v885_v0 = vpack.c.b16 %v821_v62, %v821_v62  ;;  %v886_v1 = vpack.c.b16 %v822_v63, %v822_v63 }
 0x255   : > { %1014 = vst.msk [vmem:[%s2081_s12 + $0x58] sm:$0xf] %vm991_vm2, %v885_v0 }
 0x256   : > { %1015 = vst.msk [vmem:[%s2081_s12 + $0x5c] sm:$0xf] %vm991_vm2, %v886_v1 }
 0x258   : > { %v1758_v2 = vpop.trf.xlu1 }
 0x259   : > { %v807_v3 = vunpack.c.l.b16 %v1758_v2  ;;  %v808_v4 = vunpack.c.h.b16 %v1758_v2 }
 0x25b   : > { %v871_v5 = vpack.c.b16 %v807_v3, %v807_v3  ;;  %v872_v6 = vpack.c.b16 %v808_v4, %v808_v4 }
 0x25d   : > { %1000 = vst.msk [vmem:[%s2081_s12 + $0x20] sm:$0xf] %vm991_vm2, %v871_v5 }
 0x25e   : > { %1001 = vst.msk [vmem:[%s2081_s12 + $0x24] sm:$0xf] %vm991_vm2, %v872_v6 }
 0x260   : > { %v1759_v7 = vpop.trf.xlu1 }
 0x261   : > { %v823_v8 = vunpack.c.l.b16 %v1759_v7  ;;  %v824_v9 = vunpack.c.h.b16 %v1759_v7 }
 0x263   : > { %v887_v10 = vpack.c.b16 %v823_v8, %v823_v8  ;;  %v888_v11 = vpack.c.b16 %v824_v9, %v824_v9 }
 0x265   : > { %1016 = vst.msk [vmem:[%s2081_s12 + $0x60] sm:$0xf] %vm991_vm2, %v887_v10 }
 0x266   : > { %1017 = vst.msk [vmem:[%s2081_s12 + $0x64] sm:$0xf] %vm991_vm2, %v888_v11 }
 0x268   : > { %v1760_v12 = vpop.trf.xlu1 }
 0x269   : > { %v809_v13 = vunpack.c.l.b16 %v1760_v12  ;;  %v810_v14 = vunpack.c.h.b16 %v1760_v12 }
 0x26b   : > { %v873_v15 = vpack.c.b16 %v809_v13, %v809_v13  ;;  %v874_v16 = vpack.c.b16 %v810_v14, %v810_v14 }
 0x26d   : > { %1002 = vst.msk [vmem:[%s2081_s12 + $0x28] sm:$0xf] %vm991_vm2, %v873_v15 }
 0x26e   : > { %1003 = vst.msk [vmem:[%s2081_s12 + $0x2c] sm:$0xf] %vm991_vm2, %v874_v16 }
 0x270   : > { %v1761_v17 = vpop.trf.xlu1 }
 0x271   : > { %v825_v18 = vunpack.c.l.b16 %v1761_v17  ;;  %v826_v19 = vunpack.c.h.b16 %v1761_v17 }
 0x273   : > { %v889_v20 = vpack.c.b16 %v825_v18, %v825_v18  ;;  %v890_v21 = vpack.c.b16 %v826_v19, %v826_v19 }
 0x275   : > { %1018 = vst.msk [vmem:[%s2081_s12 + $0x68] sm:$0xf] %vm991_vm2, %v889_v20 }
 0x276   : > { %1019 = vst.msk [vmem:[%s2081_s12 + $0x6c] sm:$0xf] %vm991_vm2, %v890_v21 }
 0x278   : > { %v1762_v22 = vpop.trf.xlu1 }
 0x279   : > { %v811_v23 = vunpack.c.l.b16 %v1762_v22  ;;  %v812_v24 = vunpack.c.h.b16 %v1762_v22 }
 0x27b   : > { %v875_v25 = vpack.c.b16 %v811_v23, %v811_v23  ;;  %v876_v26 = vpack.c.b16 %v812_v24, %v812_v24 }
 0x27d   : > { %1004 = vst.msk [vmem:[%s2081_s12 + $0x30] sm:$0xf] %vm991_vm2, %v875_v25 }
 0x27e   : > { %1005 = vst.msk [vmem:[%s2081_s12 + $0x34] sm:$0xf] %vm991_vm2, %v876_v26 }
 0x280   : > { %v1763_v27 = vpop.trf.xlu1 }
 0x281   : > { %v827_v28 = vunpack.c.l.b16 %v1763_v27  ;;  %v828_v29 = vunpack.c.h.b16 %v1763_v27 }
 0x283   : > { %v891_v30 = vpack.c.b16 %v827_v28, %v827_v28  ;;  %v892_v31 = vpack.c.b16 %v828_v29, %v828_v29 }
 0x285   : > { %1020 = vst.msk [vmem:[%s2081_s12 + $0x70] sm:$0xf] %vm991_vm2, %v891_v30 }
 0x286   : > { %1021 = vst.msk [vmem:[%s2081_s12 + $0x74] sm:$0xf] %vm991_vm2, %v892_v31 }
 0x288   : > { %v1764_v32 = vpop.trf.xlu1 }
 0x289   : > { %v813_v33 = vunpack.c.l.b16 %v1764_v32  ;;  %v814_v34 = vunpack.c.h.b16 %v1764_v32 }
 0x28b   : > { %v877_v35 = vpack.c.b16 %v813_v33, %v813_v33  ;;  %v878_v36 = vpack.c.b16 %v814_v34, %v814_v34 }
 0x28d   : > { %1006 = vst.msk [vmem:[%s2081_s12 + $0x38] sm:$0xf] %vm991_vm2, %v877_v35 }
 0x28e   : > { %1007 = vst.msk [vmem:[%s2081_s12 + $0x3c] sm:$0xf] %vm991_vm2, %v878_v36 }
 0x290   : > { %v1765_v37 = vpop.trf.xlu1 }
 0x291   : > { %v829_v38 = vunpack.c.l.b16 %v1765_v37  ;;  %v830_v39 = vunpack.c.h.b16 %v1765_v37 }
 0x293   : > { %v893_v40 = vpack.c.b16 %v829_v38, %v829_v38  ;;  %v894_v41 = vpack.c.b16 %v830_v39, %v830_v39 }
 0x295   : > { %1022 = vst.msk [vmem:[%s2081_s12 + $0x78] sm:$0xf] %vm991_vm2, %v893_v40 }
 0x296   : > { %1023 = vst.msk [vmem:[%s2081_s12 + $0x7c] sm:$0xf] %vm991_vm2, %v894_v41 }
 0x297   : > { %1810 = shalt.err (!%p1807_p7)
}
 0x298   : > { %s1879_s19 = smov 64   ;;  %s1880_s9 = smov 128   ;;  %v1767_v44 = vpop.trf.xlu1  ;;  %477 = vst.msk [vmem:[%s2060_s18] sm:$0xf] %vm476_vm1, %v460_v43  ;;  %v422_v49 = vpop.f32.mrf.mxu0 }
 0x299   : > { %s1881_s3 = smov 4   ;;  %v831_v45 = vunpack.c.l.b16 %v1767_v44  ;;  %v832_v46 = vunpack.c.h.b16 %v1767_v44  ;;  %v461_v50 = vpack.c.bf16 %v422_v49, %v422_v49 }
 0x29a   : > { %1662 = dma.vmem_to_hbm [thread:$0]  (%p1968_p3), %s1088_s14, 256, %s1090_s1, %s1066_s30, %s1879_s19, %s1880_s9, %s1881_s3  }
 0x29b   : > { %v895_v47 = vpack.c.b16 %v831_v45, %v831_v45  ;;  %v896_v48 = vpack.c.b16 %v832_v46, %v832_v46  ;;  %478 = vst.msk [vmem:[%s2060_s18 + $0x4] sm:$0xf] %vm476_vm1, %v461_v50  ;;  %s1638_s1 = sshll.u32 (%p1968_p3), %s1865_s25, 7 }
 0x29c   : > { %s1101_s2 = sadd.s32 (%p1968_p3), %s1638_s1, %s1995_s20 }
 0x29d   : > { %1024 = vst.msk [vmem:[%s2081_s12 + $0x80] sm:$0xf] %vm991_vm2, %v895_v47  ;;  %s1639_s3 = sshll.u32 (%p1968_p3), %s1101_s2, 2 }
 0x29e   : > { %1025 = vst.msk [vmem:[%s2081_s12 + $0x84] sm:$0xf] %vm991_vm2, %v896_v48  ;;  %s2261_s10 = scalar_lea.vmem (%p1968_p3), %s2359_s6, %s1639_s3 }
 0x2a0   : > { %v1768_v51 = vpop.trf.xlu1  ;;  %v425_v56 = vpop.f32.mrf.mxu0 }
 0x2a1   : > { %v847_v52 = vunpack.c.l.b16 %v1768_v51  ;;  %v848_v53 = vunpack.c.h.b16 %v1768_v51  ;;  %v462_v57 = vpack.c.bf16 %v425_v56, %v425_v56 }
 0x2a3   : > { %v911_v54 = vpack.c.b16 %v847_v52, %v847_v52  ;;  %v912_v55 = vpack.c.b16 %v848_v53, %v848_v53  ;;  %479 = vst.msk [vmem:[%s2060_s18 + $0x8] sm:$0xf] %vm476_vm1, %v462_v57 }
 0x2a5   : > { %1040 = vst.msk [vmem:[%s2081_s12 + $0xc0] sm:$0xf] %vm991_vm2, %v911_v54 }
 0x2a6   : > { %1041 = vst.msk [vmem:[%s2081_s12 + $0xc4] sm:$0xf] %vm991_vm2, %v912_v55 }
 0x2a8   : > { %v1769_v58 = vpop.trf.xlu1  ;;  %v427_v63 = vpop.f32.mrf.mxu0 }
 0x2a9   : > { %v833_v59 = vunpack.c.l.b16 %v1769_v58  ;;  %v834_v60 = vunpack.c.h.b16 %v1769_v58  ;;  %v463_v0 = vpack.c.bf16 %v427_v63, %v427_v63 }
 0x2ab   : > { %v897_v61 = vpack.c.b16 %v833_v59, %v833_v59  ;;  %v898_v62 = vpack.c.b16 %v834_v60, %v834_v60  ;;  %480 = vst.msk [vmem:[%s2060_s18 + $0xc] sm:$0xf] %vm476_vm1, %v463_v0 }
 0x2ad   : > { %1026 = vst.msk [vmem:[%s2081_s12 + $0x88] sm:$0xf] %vm991_vm2, %v897_v61 }
 0x2ae   : > { %1027 = vst.msk [vmem:[%s2081_s12 + $0x8c] sm:$0xf] %vm991_vm2, %v898_v62 }
 0x2b0   : > { %v1770_v1 = vpop.trf.xlu1  ;;  %v430_v6 = vpop.f32.mrf.mxu0 }
 0x2b1   : > { %v849_v2 = vunpack.c.l.b16 %v1770_v1  ;;  %v850_v3 = vunpack.c.h.b16 %v1770_v1  ;;  %v464_v7 = vpack.c.bf16 %v430_v6, %v430_v6 }
 0x2b3   : > { %v913_v4 = vpack.c.b16 %v849_v2, %v849_v2  ;;  %v914_v5 = vpack.c.b16 %v850_v3, %v850_v3  ;;  %481 = vst.msk [vmem:[%s2060_s18 + $0x10] sm:$0xf] %vm476_vm1, %v464_v7 }
 0x2b5   : > { %1042 = vst.msk [vmem:[%s2081_s12 + $0xc8] sm:$0xf] %vm991_vm2, %v913_v4 }
 0x2b6   : > { %1043 = vst.msk [vmem:[%s2081_s12 + $0xcc] sm:$0xf] %vm991_vm2, %v914_v5 }
 0x2b8   : > { %v1771_v8 = vpop.trf.xlu1  ;;  %v432_v13 = vpop.f32.mrf.mxu0 }
 0x2b9   : > { %v835_v9 = vunpack.c.l.b16 %v1771_v8  ;;  %v836_v10 = vunpack.c.h.b16 %v1771_v8  ;;  %v465_v14 = vpack.c.bf16 %v432_v13, %v432_v13 }
 0x2bb   : > { %v899_v11 = vpack.c.b16 %v835_v9, %v835_v9  ;;  %v900_v12 = vpack.c.b16 %v836_v10, %v836_v10  ;;  %482 = vst.msk [vmem:[%s2060_s18 + $0x14] sm:$0xf] %vm476_vm1, %v465_v14 }
 0x2bd   : > { %1028 = vst.msk [vmem:[%s2081_s12 + $0x90] sm:$0xf] %vm991_vm2, %v899_v11 }
 0x2be   : > { %1029 = vst.msk [vmem:[%s2081_s12 + $0x94] sm:$0xf] %vm991_vm2, %v900_v12 }
 0x2c0   : > { %v1772_v15 = vpop.trf.xlu1  ;;  %v435_v20 = vpop.f32.mrf.mxu0 }
 0x2c1   : > { %v851_v16 = vunpack.c.l.b16 %v1772_v15  ;;  %v852_v17 = vunpack.c.h.b16 %v1772_v15  ;;  %v466_v21 = vpack.c.bf16 %v435_v20, %v435_v20  ;;  %v1128_v20 = vld [vmem:[%s2081_s12 + $0x10] sm:$0xff] (%p1968_p3)  }
 0x2c2   : > { %1129 = vst [vmem:[%s2261_s10 + $0x10] sm:$0xff] (%p1968_p3), %v1128_v20  }
 0x2c3   : > { %v915_v18 = vpack.c.b16 %v851_v16, %v851_v16  ;;  %v916_v19 = vpack.c.b16 %v852_v17, %v852_v17  ;;  %483 = vst.msk [vmem:[%s2060_s18 + $0x18] sm:$0xf] %vm476_vm1, %v466_v21  ;;  %v1132_v21 = vld [vmem:[%s2081_s12 + $0x18] sm:$0xff] (%p1968_p3)  }
 0x2c4   : > { %1133 = vst [vmem:[%s2261_s10 + $0x18] sm:$0xff] (%p1968_p3), %v1132_v21  }
 0x2c5   : > { %1044 = vst.msk [vmem:[%s2081_s12 + $0xd0] sm:$0xf] %vm991_vm2, %v915_v18  ;;  %v1120_v18 = vld [vmem:[%s2081_s12] sm:$0xff] (%p1968_p3)  }
 0x2c6   : > { %1045 = vst.msk [vmem:[%s2081_s12 + $0xd4] sm:$0xf] %vm991_vm2, %v916_v19  ;;  %v1124_v19 = vld [vmem:[%s2081_s12 + $0x8] sm:$0xff] (%p1968_p3)  }
 0x2c7   : > { %1121 = vst [vmem:[%s2261_s10] sm:$0xff] (%p1968_p3), %v1120_v18  }
 0x2c8   : > { %v1773_v22 = vpop.trf.xlu1  ;;  %v437_v27 = vpop.f32.mrf.mxu0  ;;  %1125 = vst [vmem:[%s2261_s10 + $0x8] sm:$0xff] (%p1968_p3), %v1124_v19  }
 0x2c9   : > { %v837_v23 = vunpack.c.l.b16 %v1773_v22  ;;  %v838_v24 = vunpack.c.h.b16 %v1773_v22  ;;  %v467_v28 = vpack.c.bf16 %v437_v27, %v437_v27  ;;  %v1136_v22 = vld [vmem:[%s2081_s12 + $0x20] sm:$0xff] (%p1968_p3)   ;;  %v1156_v27 = vld [vmem:[%s2081_s12 + $0x48] sm:$0xff] (%p1968_p3)  }
 0x2ca   : > { %1137 = vst [vmem:[%s2261_s10 + $0x20] sm:$0xff] (%p1968_p3), %v1136_v22  }
 0x2cb   : > { %v901_v25 = vpack.c.b16 %v837_v23, %v837_v23  ;;  %v902_v26 = vpack.c.b16 %v838_v24, %v838_v24  ;;  %484 = vst.msk [vmem:[%s2060_s18 + $0x1c] sm:$0xf] %vm476_vm1, %v467_v28  ;;  %v1140_v23 = vld [vmem:[%s2081_s12 + $0x28] sm:$0xff] (%p1968_p3)   ;;  %v1144_v24 = vld [vmem:[%s2081_s12 + $0x30] sm:$0xff] (%p1968_p3)  }
 0x2cc   : > { %1141 = vst [vmem:[%s2261_s10 + $0x28] sm:$0xff] (%p1968_p3), %v1140_v23   ;;  %v1160_v28 = vld [vmem:[%s2081_s12 + $0x50] sm:$0xff] (%p1968_p3)  }
 0x2cd   : > { %1030 = vst.msk [vmem:[%s2081_s12 + $0x98] sm:$0xf] %vm991_vm2, %v901_v25  ;;  %v1148_v25 = vld [vmem:[%s2081_s12 + $0x38] sm:$0xff] (%p1968_p3)  }
 0x2ce   : > { %1031 = vst.msk [vmem:[%s2081_s12 + $0x9c] sm:$0xf] %vm991_vm2, %v902_v26  ;;  %v1152_v26 = vld [vmem:[%s2081_s12 + $0x40] sm:$0xff] (%p1968_p3)  }
 0x2cf   : > { %1145 = vst [vmem:[%s2261_s10 + $0x30] sm:$0xff] (%p1968_p3), %v1144_v24  }
 0x2d0   : > { %v1774_v29 = vpop.trf.xlu1  ;;  %v440_v34 = vpop.f32.mrf.mxu0  ;;  %1149 = vst [vmem:[%s2261_s10 + $0x38] sm:$0xff] (%p1968_p3), %v1148_v25  }
 0x2d1   : > { %v853_v30 = vunpack.c.l.b16 %v1774_v29  ;;  %v854_v31 = vunpack.c.h.b16 %v1774_v29  ;;  %v468_v35 = vpack.c.bf16 %v440_v34, %v440_v34  ;;  %1153 = vst [vmem:[%s2261_s10 + $0x80] sm:$0xff] (%p1968_p3), %v1152_v26   ;;  %v1164_v29 = vld [vmem:[%s2081_s12 + $0x58] sm:$0xff] (%p1968_p3)   ;;  %v1184_v34 = vld [vmem:[%s2081_s12 + $0x80] sm:$0xff] (%p1968_p3)  }
 0x2d2   : > { %1157 = vst [vmem:[%s2261_s10 + $0x88] sm:$0xff] (%p1968_p3), %v1156_v27  }
 0x2d3   : > { %v917_v32 = vpack.c.b16 %v853_v30, %v853_v30  ;;  %v918_v33 = vpack.c.b16 %v854_v31, %v854_v31  ;;  %485 = vst.msk [vmem:[%s2060_s18 + $0x20] sm:$0xf] %vm476_vm1, %v468_v35  ;;  %v1168_v30 = vld [vmem:[%s2081_s12 + $0x60] sm:$0xff] (%p1968_p3)   ;;  %v1172_v31 = vld [vmem:[%s2081_s12 + $0x68] sm:$0xff] (%p1968_p3)  }
 0x2d4   : > { %1161 = vst [vmem:[%s2261_s10 + $0x90] sm:$0xff] (%p1968_p3), %v1160_v28   ;;  %v1188_v35 = vld [vmem:[%s2081_s12 + $0x88] sm:$0xff] (%p1968_p3)  }
 0x2d5   : > { %1046 = vst.msk [vmem:[%s2081_s12 + $0xd8] sm:$0xf] %vm991_vm2, %v917_v32  ;;  %v1176_v32 = vld [vmem:[%s2081_s12 + $0x70] sm:$0xff] (%p1968_p3)  }
 0x2d6   : > { %1047 = vst.msk [vmem:[%s2081_s12 + $0xdc] sm:$0xf] %vm991_vm2, %v918_v33  ;;  %v1180_v33 = vld [vmem:[%s2081_s12 + $0x78] sm:$0xff] (%p1968_p3)  }
 0x2d7   : > { %1165 = vst [vmem:[%s2261_s10 + $0x98] sm:$0xff] (%p1968_p3), %v1164_v29  }
 0x2d8   : > { %v1775_v36 = vpop.trf.xlu1  ;;  %v442_v41 = vpop.f32.mrf.mxu0  ;;  %1169 = vst [vmem:[%s2261_s10 + $0xa0] sm:$0xff] (%p1968_p3), %v1168_v30  }
 0x2d9   : > { %v839_v37 = vunpack.c.l.b16 %v1775_v36  ;;  %v840_v38 = vunpack.c.h.b16 %v1775_v36  ;;  %v469_v42 = vpack.c.bf16 %v442_v41, %v442_v41  ;;  %1173 = vst [vmem:[%s2261_s10 + $0xa8] sm:$0xff] (%p1968_p3), %v1172_v31   ;;  %v1192_v36 = vld [vmem:[%s2081_s12 + $0x90] sm:$0xff] (%p1968_p3)  }
 0x2da   : > { %1177 = vst [vmem:[%s2261_s10 + $0xb0] sm:$0xff] (%p1968_p3), %v1176_v32  }
 0x2db   : > { %v903_v39 = vpack.c.b16 %v839_v37, %v839_v37  ;;  %v904_v40 = vpack.c.b16 %v840_v38, %v840_v38  ;;  %486 = vst.msk [vmem:[%s2060_s18 + $0x24] sm:$0xf] %vm476_vm1, %v469_v42  ;;  %v1196_v37 = vld [vmem:[%s2081_s12 + $0x98] sm:$0xff] (%p1968_p3)   ;;  %v1216_v42 = vld [vmem:[%s2081_s12 + $0xc0] sm:$0xff] (%p1968_p3)  }
 0x2dc   : > { %1181 = vst [vmem:[%s2261_s10 + $0xb8] sm:$0xff] (%p1968_p3), %v1180_v33  }
 0x2dd   : > { %1032 = vst.msk [vmem:[%s2081_s12 + $0xa0] sm:$0xf] %vm991_vm2, %v903_v39 }
 0x2de   : > { %1033 = vst.msk [vmem:[%s2081_s12 + $0xa4] sm:$0xf] %vm991_vm2, %v904_v40 }
 0x2df   : > { %1185 = vst [vmem:[%s2261_s10 + $0x100] sm:$0xff] (%p1968_p3), %v1184_v34  }
 0x2e0   : > { %v1776_v43 = vpop.trf.xlu1  ;;  %v445_v48 = vpop.f32.mrf.mxu0  ;;  %1189 = vst [vmem:[%s2261_s10 + $0x108] sm:$0xff] (%p1968_p3), %v1188_v35  }
 0x2e1   : > { %v855_v44 = vunpack.c.l.b16 %v1776_v43  ;;  %v856_v45 = vunpack.c.h.b16 %v1776_v43  ;;  %v470_v49 = vpack.c.bf16 %v445_v48, %v445_v48  ;;  %1193 = vst [vmem:[%s2261_s10 + $0x110] sm:$0xff] (%p1968_p3), %v1192_v36   ;;  %v1220_v43 = vld [vmem:[%s2081_s12 + $0xc8] sm:$0xff] (%p1968_p3)  }
 0x2e2   : > { %1197 = vst [vmem:[%s2261_s10 + $0x118] sm:$0xff] (%p1968_p3), %v1196_v37  }
 0x2e3   : > { %v919_v46 = vpack.c.b16 %v855_v44, %v855_v44  ;;  %v920_v47 = vpack.c.b16 %v856_v45, %v856_v45  ;;  %487 = vst.msk [vmem:[%s2060_s18 + $0x28] sm:$0xf] %vm476_vm1, %v470_v49  ;;  %v1224_v44 = vld [vmem:[%s2081_s12 + $0xd0] sm:$0xff] (%p1968_p3)   ;;  %v1228_v45 = vld [vmem:[%s2081_s12 + $0xd8] sm:$0xff] (%p1968_p3)  }
 0x2e4   : > { %1217 = vst [vmem:[%s2261_s10 + $0x180] sm:$0xff] (%p1968_p3), %v1216_v42  }
 0x2e5   : > { %1048 = vst.msk [vmem:[%s2081_s12 + $0xe0] sm:$0xf] %vm991_vm2, %v919_v46  ;;  %v1200_v38 = vld [vmem:[%s2081_s12 + $0xa0] sm:$0xff] (%p1968_p3)  }
 0x2e6   : > { %1049 = vst.msk [vmem:[%s2081_s12 + $0xe4] sm:$0xf] %vm991_vm2, %v920_v47 }
 0x2e7   : > { %1201 = vst [vmem:[%s2261_s10 + $0x120] sm:$0xff] (%p1968_p3), %v1200_v38  }
 0x2e8   : > { %v1777_v50 = vpop.trf.xlu1  ;;  %v447_v55 = vpop.f32.mrf.mxu0  ;;  %1221 = vst [vmem:[%s2261_s10 + $0x188] sm:$0xff] (%p1968_p3), %v1220_v43  }
 0x2e9   : > { %v841_v51 = vunpack.c.l.b16 %v1777_v50  ;;  %v842_v52 = vunpack.c.h.b16 %v1777_v50  ;;  %v471_v56 = vpack.c.bf16 %v447_v55, %v447_v55  ;;  %1225 = vst [vmem:[%s2261_s10 + $0x190] sm:$0xff] (%p1968_p3), %v1224_v44  }
 0x2ea   : > { %1229 = vst [vmem:[%s2261_s10 + $0x198] sm:$0xff] (%p1968_p3), %v1228_v45  }
 0x2eb   : > { %v905_v53 = vpack.c.b16 %v841_v51, %v841_v51  ;;  %v906_v54 = vpack.c.b16 %v842_v52, %v842_v52  ;;  %488 = vst.msk [vmem:[%s2060_s18 + $0x2c] sm:$0xf] %vm476_vm1, %v471_v56 }
 0x2ed   : > { %1034 = vst.msk [vmem:[%s2081_s12 + $0xa8] sm:$0xf] %vm991_vm2, %v905_v53  ;;  %v1232_v46 = vld [vmem:[%s2081_s12 + $0xe0] sm:$0xff] (%p1968_p3)  }
 0x2ee   : > { %1035 = vst.msk [vmem:[%s2081_s12 + $0xac] sm:$0xf] %vm991_vm2, %v906_v54 }
 0x2ef   : > { %1233 = vst [vmem:[%s2261_s10 + $0x1a0] sm:$0xff] (%p1968_p3), %v1232_v46  }
 0x2f0   : > { %v1778_v57 = vpop.trf.xlu1 }
 0x2f1   : > { %v857_v58 = vunpack.c.l.b16 %v1778_v57  ;;  %v858_v59 = vunpack.c.h.b16 %v1778_v57 }
 0x2f3   : > { %v921_v60 = vpack.c.b16 %v857_v58, %v857_v58  ;;  %v922_v61 = vpack.c.b16 %v858_v59, %v858_v59 }
 0x2f5   : > { %1050 = vst.msk [vmem:[%s2081_s12 + $0xe8] sm:$0xf] %vm991_vm2, %v921_v60  ;;  %v1204_v39 = vld [vmem:[%s2081_s12 + $0xa8] sm:$0xff] (%p1968_p3)  }
 0x2f6   : > { %1051 = vst.msk [vmem:[%s2081_s12 + $0xec] sm:$0xf] %vm991_vm2, %v922_v61 }
 0x2f7   : > { %1205 = vst [vmem:[%s2261_s10 + $0x128] sm:$0xff] (%p1968_p3), %v1204_v39  }
 0x2f8   : > { %v1779_v62 = vpop.trf.xlu1 }
 0x2f9   : > { %v843_v63 = vunpack.c.l.b16 %v1779_v62  ;;  %v844_v0 = vunpack.c.h.b16 %v1779_v62 }
 0x2fb   : > { %v907_v1 = vpack.c.b16 %v843_v63, %v843_v63  ;;  %v908_v2 = vpack.c.b16 %v844_v0, %v844_v0 }
 0x2fd   : > { %1036 = vst.msk [vmem:[%s2081_s12 + $0xb0] sm:$0xf] %vm991_vm2, %v907_v1  ;;  %v1236_v47 = vld [vmem:[%s2081_s12 + $0xe8] sm:$0xff] (%p1968_p3)  }
 0x2fe   : > { %1037 = vst.msk [vmem:[%s2081_s12 + $0xb4] sm:$0xf] %vm991_vm2, %v908_v2 }
 0x2ff   : > { %1237 = vst [vmem:[%s2261_s10 + $0x1a8] sm:$0xff] (%p1968_p3), %v1236_v47  }
 0x300   : > { %v1780_v3 = vpop.trf.xlu1 }
 0x301   : > { %v859_v4 = vunpack.c.l.b16 %v1780_v3  ;;  %v860_v5 = vunpack.c.h.b16 %v1780_v3 }
 0x303   : > { %v923_v6 = vpack.c.b16 %v859_v4, %v859_v4  ;;  %v924_v7 = vpack.c.b16 %v860_v5, %v860_v5 }
 0x305   : > { %1052 = vst.msk [vmem:[%s2081_s12 + $0xf0] sm:$0xf] %vm991_vm2, %v923_v6  ;;  %v1208_v40 = vld [vmem:[%s2081_s12 + $0xb0] sm:$0xff] (%p1968_p3)  }
 0x306   : > { %1053 = vst.msk [vmem:[%s2081_s12 + $0xf4] sm:$0xf] %vm991_vm2, %v924_v7 }
 0x307   : > { %1209 = vst [vmem:[%s2261_s10 + $0x130] sm:$0xff] (%p1968_p3), %v1208_v40  }
 0x308   : > { %v1781_v8 = vpop.trf.xlu1 }
 0x309   : > { %v845_v9 = vunpack.c.l.b16 %v1781_v8  ;;  %v846_v10 = vunpack.c.h.b16 %v1781_v8 }
 0x30b   : > { %v909_v11 = vpack.c.b16 %v845_v9, %v845_v9  ;;  %v910_v12 = vpack.c.b16 %v846_v10, %v846_v10 }
 0x30d   : > { %1038 = vst.msk [vmem:[%s2081_s12 + $0xb8] sm:$0xf] %vm991_vm2, %v909_v11  ;;  %v1240_v48 = vld [vmem:[%s2081_s12 + $0xf0] sm:$0xff] (%p1968_p3)  }
 0x30e   : > { %1039 = vst.msk [vmem:[%s2081_s12 + $0xbc] sm:$0xf] %vm991_vm2, %v910_v12 }
 0x30f   : > { %1241 = vst [vmem:[%s2261_s10 + $0x1b0] sm:$0xff] (%p1968_p3), %v1240_v48  }
 0x310   : > { %v1782_v13 = vpop.trf.xlu1 }
 0x311   : > { %v861_v14 = vunpack.c.l.b16 %v1782_v13  ;;  %v862_v15 = vunpack.c.h.b16 %v1782_v13 }
 0x312   : > { %1098 = sbr.rel (!%p1968_p3) target bundleno = 799 (0x31f), region = 48 }
 0x313   : > { %v925_v16 = vpack.c.b16 %v861_v14, %v861_v14  ;;  %v926_v17 = vpack.c.b16 %v862_v15, %v862_v15 }
 0x315   : > { %1054 = vst.msk [vmem:[%s2081_s12 + $0xf8] sm:$0xf] %vm991_vm2, %v925_v16  ;;  %v1212_v41 = vld [vmem:[%s2081_s12 + $0xb8] sm:$0xff] (%p1968_p3)  }
 0x316   : > { %1055 = vst.msk [vmem:[%s2081_s12 + $0xfc] sm:$0xf] %vm991_vm2, %v926_v17 }
 0x317   : > { %1213 = vst [vmem:[%s2261_s10 + $0x138] sm:$0xff] %v1212_v41  }
 0x31d   : > { %v1244_v49 = vld [vmem:[%s2081_s12 + $0xf8] sm:$0xff]  }
 0x31e   : > { %1245 = vst [vmem:[%s2261_s10 + $0x1b8] sm:$0xff] %v1244_v49  }
 0x31f PF: > { %p1668_p3 = scmp.ge.s32.totalorder %s1877_s28, 2  ;;  %s1417_s25 = sand.u32 1, %s1849_s21  }
 0x320   : > { %s1418_s20 = scalar_lea.sflag [#allocation3], %s1417_s25 }
 0x321   : > { %p1665_p9 = pnand %p1668_p3, %p1977_p8 }
 0x323   : > { %p1666_p10 = pneg %p1665_p9 }
 0x325   : > { %1844 = dma.done.wait (%p1666_p10), %s1418_s20, 256  }
 0x326   : > { %1846 = vsyncadd (%p1666_p10), %s1418_s20, 4294967040  ;;  %s20_s28 = sadd.s32 1, %s1877_s28   ;;  %s2370_s21 = smov %s1853_s22 }
 0x327   : > { %p17_p11 = scmp.ge.s32.totalorder %s20_s28, 6   ;;  %s2371_s22 = smov %s1857_s23 }
 0x328   : > { %s2372_s23 = smov %s1986_s15  ;;  %s2373_s24 = smov %s1869_s26 }
 0x329   : > { %s2374_s25 = smov %s1873_s27  ;;  %s2375_s26 = smov %s2378_s7 }
 0x32a   : > { %s2376_s27 = smov %s2382_s8  ;;  %19 = sbr.rel (!%p17_p11) target bundleno = 10 (0xa), region = 136 }
 0x32f   :  { %1431 = vsyncpa [#allocation3], 1 }
 0x330   :  { %1433 = vsyncpa [#allocation3 + $0x1], 1 }

</bundles_post_ra>
